<compile_context>
chip_gen: v7x
topology: tpu7x:2x2x1
jax: 0.10.0
libtpu: 0.0.40
codegen_flags: <defaults>
</compile_context>

<pallas_src>
import jax
import jax.numpy as jnp
from jax import lax
from jax.experimental import pallas as pl
from jax.experimental.pallas import tpu as pltpu

KSIZE = 7
PAD = (KSIZE - 1) // 2  # 3


def _round_up(a, b):
    return -(-a // b) * b


def _make_kernel(C, HWp):
    inv_c = 1.0 / C

    def kernel(bn_ref, x_ref, t_ref, y_ref, scale_ref):
        """bn_ref: SMEM (1,) BN shift (BN scale is folded into t_ref).
        x_ref: (Nb, C*HWp)  t_ref: (2*HWp, HWp) bf16  y_ref: (Nb, C*HWp)  scale_ref: (Nb, HWp)
        """
        # ChannelPool over C via unrolled static lane slices (VPU-only, f32 math).
        x0 = x_ref[:, 0:HWp].astype(jnp.float32)
        xmax, xsum = x0, x0
        for c in range(1, C):
            xc = x_ref[:, c * HWp:(c + 1) * HWp].astype(jnp.float32)
            xmax = jnp.maximum(xmax, xc)
            xsum = xsum + xc
        pooled = jnp.concatenate([xmax, xsum * inv_c], axis=-1).astype(jnp.bfloat16)

        # 7x7 "same" conv (2->1) + folded BN scale: a single bf16 MXU matmul, K = 2*HWp.
        conv = jnp.dot(pooled, t_ref[...], preferred_element_type=jnp.float32)
        s = jax.nn.sigmoid(conv + bn_ref[0])                       # (Nb, HWp) f32
        scale_ref[...] = s.astype(scale_ref.dtype)

        # Epilogue: re-read x per channel; keeps live vregs O(Nb*HWp), not O(Nb*C*HWp).
        for c in range(C):
            sl = slice(c * HWp, (c + 1) * HWp)
            y_ref[:, sl] = (x_ref[:, sl].astype(jnp.float32) * s).astype(y_ref.dtype)

    return kernel


def _build_toeplitz(conv_w, bn_scale, H, W, HWp):
    """conv_w: (1, 2, 7, 7) -> T_cat: (2*HWp, HWp) bf16 so that
    conv_flat = concat([max_flat, mean_flat], -1) @ T_cat, with BN scale folded in.

    T[c][i_in, i_out] = bn_scale * w[c, h_in-h_out+PAD, w_in-w_out+PAD] when both
    offsets fall in [0, 7); zeros elsewhere encode the zero padding."""
    HW = H * W
    idx = jnp.arange(HW)
    h, w = idx // W, idx % W
    dh = h[:, None] - h[None, :] + PAD            # rows: i_in, cols: i_out
    dw = w[:, None] - w[None, :] + PAD
    valid = (dh >= 0) & (dh < KSIZE) & (dw >= 0) & (dw < KSIZE)
    taps = conv_w[0][:, jnp.clip(dh, 0, KSIZE - 1), jnp.clip(dw, 0, KSIZE - 1)]
    t = jnp.where(valid[None], taps, 0.0) * bn_scale[0]            # (2, HW, HW)
    t_cat = jnp.zeros((2 * HWp, HWp), jnp.float32)
    t_cat = t_cat.at[:HW, :HW].set(t[0])                           # K rows for max channel
    t_cat = t_cat.at[HWp:HWp + HW, :HW].set(t[1])                  # K rows for mean channel
    return t_cat.astype(jnp.bfloat16)


def _vmem_budget_bytes():
    cap = 64 << 20                                  # conservative fallback (v7x per-core VMEM)
    try:
        cap = int(getattr(pltpu.get_tpu_info(), "vmem_capacity_bytes", cap))
    except Exception:
        pass
    return (cap * 3) // 4                           # leave headroom for compiler scratch


def _pick_block_n(N, C, HWp, itemsize, budget, t_bytes):
    per_row = 2 * (2 * C * HWp + HWp) * itemsize    # double-buffered x + y + scale per row
    avail = max(budget - t_bytes - (8 << 20), 8 * per_row)
    nb = int(min(avail // per_row, 512))            # M ~ 256 already saturates the MXU
    if N >= 16:                                     # v7x: keep >= 2 grid steps (both TCs)
        nb = min(nb, _round_up((N + 1) // 2, 8))
    nb = min(nb, _round_up(N, 8))                   # don't pad tiny batches to huge blocks
    return max(8, (nb // 8) * 8)


def spatial_gate(x, conv_w, bn_gamma, bn_beta, bn_mean, bn_var, eps=1e-5):
    """x: (N, C, H, W); conv_w: (1, 2, 7, 7). Returns (x * scale, scale)."""
    N, C, H, W = x.shape
    HW = H * W
    HWp = _round_up(HW, 128)                        # lane-dense spatial dim
    itemsize = x.dtype.itemsize

    # Fold eval-mode BatchNorm: scale goes into the Toeplitz weights, shift into SMEM.
    bn_scale = (bn_gamma / jnp.sqrt(bn_var + eps)).astype(jnp.float32)   # (1,)
    bn_shift = (bn_beta - bn_mean * bn_scale).astype(jnp.float32)        # (1,)

    budget = _vmem_budget_bytes()
    t_bytes = 2 * (2 * HWp * HWp * 2)               # worst case: double-buffered bf16 T_cat
    if t_bytes > budget // 2:
        # TODO(synk): switch to banded per-kh (W, W) matmuls (bounded VMEM) for large H*W;
        # the dense Toeplitz form targets the small gate feature maps this module uses.
        raise ValueError(f"H*W={HW} too large for the dense-Toeplitz SpatialGate kernel")

    t_cat = _build_toeplitz(conv_w.astype(jnp.float32), bn_scale, H, W, HWp)

    block_n = _pick_block_n(N, C, HWp, itemsize, budget, t_bytes)
    n_pad = _round_up(N, block_n)

    # Lane-dense 2D streams: (N, C*HWp); each channel padded to HWp lanes, batch to n_pad.
    x2 = x.reshape(N, C, HW)
    if HWp != HW:
        x2 = jnp.pad(x2, ((0, 0), (0, 0), (0, HWp - HW)))
    x2 = x2.reshape(N, C * HWp)
    if n_pad != N:
        x2 = jnp.pad(x2, ((0, n_pad - N), (0, 0)))

    kernel = _make_kernel(C, HWp)
    out_shapes = (
        jax.ShapeDtypeStruct((n_pad, C * HWp), x.dtype),
        jax.ShapeDtypeStruct((n_pad, HWp), x.dtype),
    )
    grid = (n_pad // block_n,)
    vmem_limit = int(budget)

    def call(single_buffer_t):
        t_kwargs = {"pipeline_mode": pl.Buffered(1)} if single_buffer_t else {}
        out = pl.pallas_call(
            kernel,
            out_shape=out_shapes,
            grid_spec=pltpu.PrefetchScalarGridSpec(
                num_scalar_prefetch=0,
                grid=grid,
                in_specs=[
                    pl.BlockSpec(memory_space=pltpu.MemorySpace.SMEM),          # BN shift
                    pl.BlockSpec((block_n, C * HWp), lambda n: (n, 0)),         # x block
                    pl.BlockSpec((2 * HWp, HWp), lambda n: (0, 0), **t_kwargs), # T (resident)
                ],
                out_specs=[
                    pl.BlockSpec((block_n, C * HWp), lambda n: (n, 0)),         # x * scale
                    pl.BlockSpec((block_n, HWp), lambda n: (n, 0)),             # scale
                ],
            ),
            compiler_params=pltpu.CompilerParams(
                dimension_semantics=("parallel",),   # batch blocks independent -> v7x both TCs
                vmem_limit_bytes=vmem_limit,
            ),
        )(bn_shift, x2, t_cat)
        return jax.block_until_ready(out)

    try:
        y2, s2 = call(True)
    except Exception:
        # Fallback for Pallas versions without pipeline_mode on outer pallas_call specs.
        y2, s2 = call(False)

    y = y2[:N].reshape(N, C, HWp)[:, :, :HW].reshape(N, C, H, W)
    scale = s2[:N].reshape(N, 1, HWp)[:, :, :HW].reshape(N, 1, H, W)
    return y, scale


def spatial_gate_reference(x, conv_w, bn_gamma, bn_beta, bn_mean, bn_var, eps=1e-5):
    xmax = jnp.max(x, axis=1, keepdims=True)
    xmean = jnp.mean(x, axis=1, keepdims=True)
    pooled = jnp.concatenate([xmax, xmean], axis=1)                 # (N, 2, H, W)
    out = lax.conv_general_dilated(
        pooled, conv_w, window_strides=(1, 1), padding=[(PAD, PAD), (PAD, PAD)],
        dimension_numbers=("NCHW", "OIHW", "NCHW"))
    g = bn_gamma.reshape(1, -1, 1, 1)
    b = bn_beta.reshape(1, -1, 1, 1)
    m = bn_mean.reshape(1, -1, 1, 1)
    v = bn_var.reshape(1, -1, 1, 1)
    out = (out - m) / jnp.sqrt(v + eps) * g + b
    scale = jax.nn.sigmoid(out)
    return x * scale, scale


if __name__ == "__main__":
    key = jax.random.PRNGKey(0)
    k1, k2, k3, k4, k5, k6 = jax.random.split(key, 6)

    N, C, H, W = 2, 4, 16, 16
    x = jax.random.normal(k1, (N, C, H, W), jnp.float32)

    # Deterministic synthetic parameters (BatchNorm applied in inference mode).
    conv_w = 0.1 * jax.random.normal(k2, (1, 2, KSIZE, KSIZE), jnp.float32)
    bn_gamma = 1.0 + 0.1 * jax.random.normal(k3, (1,), jnp.float32)
    bn_beta = 0.1 * jax.random.normal(k4, (1,), jnp.float32)
    bn_mean = 0.05 * jax.random.normal(k5, (1,), jnp.float32)
    bn_var = 0.5 + jnp.abs(jax.random.normal(k6, (1,), jnp.float32)) * 0.5

    y, scale = spatial_gate(x, conv_w, bn_gamma, bn_beta, bn_mean, bn_var)
    jax.block_until_ready((y, scale))

    y_exp, scale_exp = spatial_gate_reference(x, conv_w, bn_gamma, bn_beta, bn_mean, bn_var)
    # Tolerance reflects bf16 MXU operands (Toeplitz weights + pooled activations);
    # accumulation stays in f32 via preferred_element_type.
    assert jnp.allclose(scale, scale_exp, atol=2e-2, rtol=2e-2), \
        float(jnp.max(jnp.abs(scale - scale_exp)))
    assert jnp.allclose(y, y_exp, atol=2e-2, rtol=2e-2), \
        float(jnp.max(jnp.abs(y - y_exp)))

    print("KERNEL_OK")
</pallas_src>

<mosaic_0001>
module attributes {stable_mosaic.version = 11 : i64} {
  func.func @kernel(%arg0: i32, %arg1: memref<1xf32, #tpu.memory_space<smem>>, %arg2: memref<8x1024xf32, #tpu.memory_space<vmem>>, %arg3: memref<512x256xbf16, #tpu.memory_space<vmem>>, %arg4: memref<8x1024xf32, #tpu.memory_space<vmem>>, %arg5: memref<8x256xf32, #tpu.memory_space<vmem>>) attributes {dimension_semantics = [#tpu.dimension_semantics<parallel>], iteration_bounds = array<i64: 1>, scalar_prefetch = 0 : i64, scratch_operands = 0 : i64, tpu.core_type = #tpu.core_type<tc>, window_params = [{transform_indices = @transform_0, window_bounds = array<i64: 1>}, {transform_indices = @transform_1, window_bounds = array<i64: 8, 1024>}, {pipeline_mode = #tpu.pipeline_mode<synchronous>, transform_indices = @transform_2, window_bounds = array<i64: 512, 256>}, {transform_indices = @transform_3, window_bounds = array<i64: 8, 1024>}, {transform_indices = @transform_4, window_bounds = array<i64: 8, 256>}]} {
    %c0 = arith.constant 0 : index
    %c0_0 = arith.constant 0 : index
    %0 = vector.load %arg2[%c0, %c0_0] : memref<8x1024xf32, #tpu.memory_space<vmem>>, vector<8x256xf32>
    %c0_1 = arith.constant 0 : index
    %c256 = arith.constant 256 : index
    %1 = vector.load %arg2[%c0_1, %c256] : memref<8x1024xf32, #tpu.memory_space<vmem>>, vector<8x256xf32>
    %2 = arith.maximumf %0, %1 : vector<8x256xf32>
    %3 = arith.addf %0, %1 : vector<8x256xf32>
    %c0_2 = arith.constant 0 : index
    %c512 = arith.constant 512 : index
    %4 = vector.load %arg2[%c0_2, %c512] : memref<8x1024xf32, #tpu.memory_space<vmem>>, vector<8x256xf32>
    %5 = arith.maximumf %2, %4 : vector<8x256xf32>
    %6 = arith.addf %3, %4 : vector<8x256xf32>
    %c0_3 = arith.constant 0 : index
    %c768 = arith.constant 768 : index
    %7 = vector.load %arg2[%c0_3, %c768] : memref<8x1024xf32, #tpu.memory_space<vmem>>, vector<8x256xf32>
    %8 = arith.maximumf %5, %7 : vector<8x256xf32>
    %9 = arith.addf %6, %7 : vector<8x256xf32>
    %cst = arith.constant 2.500000e-01 : f32
    %10 = vector.broadcast %cst : f32 to vector<8x256xf32>
    %11 = arith.mulf %9, %10 : vector<8x256xf32>
    %12 = tpu.concatenate %8, %11 in 1 : vector<8x256xf32>, vector<8x256xf32> -> vector<8x512xf32>
    %13 = arith.truncf %12 : vector<8x512xf32> to vector<8x512xbf16>
    %c0_4 = arith.constant 0 : index
    %c0_5 = arith.constant 0 : index
    %14 = vector.load %arg3[%c0_4, %c0_5] : memref<512x256xbf16, #tpu.memory_space<vmem>>, vector<512x256xbf16>
    %cst_6 = arith.constant dense<0.000000e+00> : vector<8x256xf32>
    %15 = tpu.matmul %13, %14, %cst_6 {dimension_numbers = #tpu.dot_dimension_numbers<[1], [0], [0], [1], [0, 0, 1, 1], [], []>} : vector<8x512xbf16>, vector<512x256xbf16>, vector<8x256xf32> -> vector<8x256xf32>
    %c0_7 = arith.constant 0 : index
    %16 = memref.load %arg1[%c0_7] : memref<1xf32, #tpu.memory_space<smem>>
    %17 = vector.broadcast %16 : f32 to vector<8x256xf32>
    %18 = arith.addf %15, %17 : vector<8x256xf32>
    %19 = arith.negf %18 : vector<8x256xf32>
    %20 = math.exp %19 : vector<8x256xf32>
    %cst_8 = arith.constant 1.000000e+00 : f32
    %21 = vector.broadcast %cst_8 : f32 to vector<8x256xf32>
    %22 = arith.addf %21, %20 : vector<8x256xf32>
    %23 = arith.divf %21, %22 : vector<8x256xf32>
    %c0_9 = arith.constant 0 : index
    %c0_10 = arith.constant 0 : index
    %24 = vector.load %arg5[%c0_9, %c0_10] : memref<8x256xf32, #tpu.memory_space<vmem>>, vector<8x256xf32>
    tpu.vector_store %arg5[%c0_9, %c0_10], %23 {strides = array<i32>} : memref<8x256xf32, #tpu.memory_space<vmem>>, vector<8x256xf32>,
    %c0_11 = arith.constant 0 : index
    %c0_12 = arith.constant 0 : index
    %25 = vector.load %arg2[%c0_11, %c0_12] : memref<8x1024xf32, #tpu.memory_space<vmem>>, vector<8x256xf32>
    %26 = arith.mulf %25, %23 : vector<8x256xf32>
    %c0_13 = arith.constant 0 : index
    %c0_14 = arith.constant 0 : index
    %27 = vector.load %arg4[%c0_13, %c0_14] : memref<8x1024xf32, #tpu.memory_space<vmem>>, vector<8x256xf32>
    tpu.vector_store %arg4[%c0_13, %c0_14], %26 {strides = array<i32>} : memref<8x1024xf32, #tpu.memory_space<vmem>>, vector<8x256xf32>,
    %c0_15 = arith.constant 0 : index
    %c256_16 = arith.constant 256 : index
    %28 = vector.load %arg2[%c0_15, %c256_16] : memref<8x1024xf32, #tpu.memory_space<vmem>>, vector<8x256xf32>
    %29 = arith.mulf %28, %23 : vector<8x256xf32>
    %c0_17 = arith.constant 0 : index
    %c256_18 = arith.constant 256 : index
    %30 = vector.load %arg4[%c0_17, %c256_18] : memref<8x1024xf32, #tpu.memory_space<vmem>>, vector<8x256xf32>
    tpu.vector_store %arg4[%c0_17, %c256_18], %29 {strides = array<i32>} : memref<8x1024xf32, #tpu.memory_space<vmem>>, vector<8x256xf32>,
    %c0_19 = arith.constant 0 : index
    %c512_20 = arith.constant 512 : index
    %31 = vector.load %arg2[%c0_19, %c512_20] : memref<8x1024xf32, #tpu.memory_space<vmem>>, vector<8x256xf32>
    %32 = arith.mulf %31, %23 : vector<8x256xf32>
    %c0_21 = arith.constant 0 : index
    %c512_22 = arith.constant 512 : index
    %33 = vector.load %arg4[%c0_21, %c512_22] : memref<8x1024xf32, #tpu.memory_space<vmem>>, vector<8x256xf32>
    tpu.vector_store %arg4[%c0_21, %c512_22], %32 {strides = array<i32>} : memref<8x1024xf32, #tpu.memory_space<vmem>>, vector<8x256xf32>,
    %c0_23 = arith.constant 0 : index
    %c768_24 = arith.constant 768 : index
    %34 = vector.load %arg2[%c0_23, %c768_24] : memref<8x1024xf32, #tpu.memory_space<vmem>>, vector<8x256xf32>
    %35 = arith.mulf %34, %23 : vector<8x256xf32>
    %c0_25 = arith.constant 0 : index
    %c768_26 = arith.constant 768 : index
    %36 = vector.load %arg4[%c0_25, %c768_26] : memref<8x1024xf32, #tpu.memory_space<vmem>>, vector<8x256xf32>
    tpu.vector_store %arg4[%c0_25, %c768_26], %35 {strides = array<i32>} : memref<8x1024xf32, #tpu.memory_space<vmem>>, vector<8x256xf32>,
    return
  }
  func.func @transform_0(%arg0: i32) -> i32 {
    %c0_i32 = arith.constant 0 : i32
    %c0_i32_0 = arith.constant 0 : i32
    return %c0_i32 : i32
  }
  func.func @transform_1(%arg0: i32) -> (i32, i32) {
    %c0_i32 = arith.constant 0 : i32
    %c0_i32_0 = arith.constant 0 : i32
    return %arg0, %c0_i32 : i32, i32
  }
  func.func @transform_2(%arg0: i32) -> (i32, i32) {
    %c0_i32 = arith.constant 0 : i32
    %c0_i32_0 = arith.constant 0 : i32
    %c0_i32_1 = arith.constant 0 : i32
    return %c0_i32, %c0_i32_0 : i32, i32
  }
  func.func @transform_3(%arg0: i32) -> (i32, i32) {
    %c0_i32 = arith.constant 0 : i32
    %c0_i32_0 = arith.constant 0 : i32
    return %arg0, %c0_i32 : i32, i32
  }
  func.func @transform_4(%arg0: i32) -> (i32, i32) {
    %c0_i32 = arith.constant 0 : i32
    %c0_i32_0 = arith.constant 0 : i32
    return %arg0, %c0_i32 : i32, i32
  }
}

module attributes {stable_mosaic.version = 11 : i64} {
  func.func @kernel(%arg0: i32, %arg1: memref<1xf32, #tpu.memory_space<smem>>, %arg2: memref<8x1024xf32, #tpu.memory_space<vmem>>, %arg3: memref<512x256xbf16, #tpu.memory_space<vmem>>, %arg4: memref<8x1024xf32, #tpu.memory_space<vmem>>, %arg5: memref<8x256xf32, #tpu.memory_space<vmem>>) attributes {dimension_semantics = [#tpu.dimension_semantics<parallel>], iteration_bounds = array<i64: 1>, scalar_prefetch = 0 : i64, scratch_operands = 0 : i64, tpu.core_type = #tpu.core_type<tc>, window_params = [{transform_indices = @transform_0, window_bounds = array<i64: 1>}, {transform_indices = @transform_1, window_bounds = array<i64: 8, 1024>}, {pipeline_mode = #tpu.pipeline_mode<synchronous>, transform_indices = @transform_2, window_bounds = array<i64: 512, 256>}, {transform_indices = @transform_3, window_bounds = array<i64: 8, 1024>}, {transform_indices = @transform_4, window_bounds = array<i64: 8, 256>}]} {
    %c0 = arith.constant 0 : index
    %c0_0 = arith.constant 0 : index
    %0 = vector.load %arg2[%c0, %c0_0] : memref<8x1024xf32, #tpu.memory_space<vmem>>, vector<8x256xf32>
    %c0_1 = arith.constant 0 : index
    %c256 = arith.constant 256 : index
    %1 = vector.load %arg2[%c0_1, %c256] : memref<8x1024xf32, #tpu.memory_space<vmem>>, vector<8x256xf32>
    %2 = arith.maximumf %0, %1 : vector<8x256xf32>
    %3 = arith.addf %0, %1 : vector<8x256xf32>
    %c0_2 = arith.constant 0 : index
    %c512 = arith.constant 512 : index
    %4 = vector.load %arg2[%c0_2, %c512] : memref<8x1024xf32, #tpu.memory_space<vmem>>, vector<8x256xf32>
    %5 = arith.maximumf %2, %4 : vector<8x256xf32>
    %6 = arith.addf %3, %4 : vector<8x256xf32>
    %c0_3 = arith.constant 0 : index
    %c768 = arith.constant 768 : index
    %7 = vector.load %arg2[%c0_3, %c768] : memref<8x1024xf32, #tpu.memory_space<vmem>>, vector<8x256xf32>
    %8 = arith.maximumf %5, %7 : vector<8x256xf32>
    %9 = arith.addf %6, %7 : vector<8x256xf32>
    %cst = arith.constant 2.500000e-01 : f32
    %10 = vector.broadcast %cst : f32 to vector<8x256xf32>
    %11 = arith.mulf %9, %10 : vector<8x256xf32>
    %12 = tpu.concatenate %8, %11 in 1 : vector<8x256xf32>, vector<8x256xf32> -> vector<8x512xf32>
    %13 = arith.truncf %12 : vector<8x512xf32> to vector<8x512xbf16>
    %c0_4 = arith.constant 0 : index
    %c0_5 = arith.constant 0 : index
    %14 = vector.load %arg3[%c0_4, %c0_5] : memref<512x256xbf16, #tpu.memory_space<vmem>>, vector<512x256xbf16>
    %cst_6 = arith.constant dense<0.000000e+00> : vector<8x256xf32>
    %15 = tpu.matmul %13, %14, %cst_6 {dimension_numbers = #tpu.dot_dimension_numbers<[1], [0], [0], [1], [0, 0, 1, 1], [], []>} : vector<8x512xbf16>, vector<512x256xbf16>, vector<8x256xf32> -> vector<8x256xf32>
    %c0_7 = arith.constant 0 : index
    %16 = memref.load %arg1[%c0_7] : memref<1xf32, #tpu.memory_space<smem>>
    %17 = vector.broadcast %16 : f32 to vector<8x256xf32>
    %18 = arith.addf %15, %17 : vector<8x256xf32>
    %19 = arith.negf %18 : vector<8x256xf32>
    %20 = math.exp %19 : vector<8x256xf32>
    %cst_8 = arith.constant 1.000000e+00 : f32
    %21 = vector.broadcast %cst_8 : f32 to vector<8x256xf32>
    %22 = arith.addf %21, %20 : vector<8x256xf32>
    %23 = arith.divf %21, %22 : vector<8x256xf32>
    %c0_9 = arith.constant 0 : index
    %c0_10 = arith.constant 0 : index
    %24 = vector.load %arg5[%c0_9, %c0_10] : memref<8x256xf32, #tpu.memory_space<vmem>>, vector<8x256xf32>
    tpu.vector_store %arg5[%c0_9, %c0_10], %23 {strides = array<i32>} : memref<8x256xf32, #tpu.memory_space<vmem>>, vector<8x256xf32>,
    %c0_11 = arith.constant 0 : index
    %c0_12 = arith.constant 0 : index
    %25 = vector.load %arg2[%c0_11, %c0_12] : memref<8x1024xf32, #tpu.memory_space<vmem>>, vector<8x256xf32>
    %26 = arith.mulf %25, %23 : vector<8x256xf32>
    %c0_13 = arith.constant 0 : index
    %c0_14 = arith.constant 0 : index
    %27 = vector.load %arg4[%c0_13, %c0_14] : memref<8x1024xf32, #tpu.memory_space<vmem>>, vector<8x256xf32>
    tpu.vector_store %arg4[%c0_13, %c0_14], %26 {strides = array<i32>} : memref<8x1024xf32, #tpu.memory_space<vmem>>, vector<8x256xf32>,
    %c0_15 = arith.constant 0 : index
    %c256_16 = arith.constant 256 : index
    %28 = vector.load %arg2[%c0_15, %c256_16] : memref<8x1024xf32, #tpu.memory_space<vmem>>, vector<8x256xf32>
    %29 = arith.mulf %28, %23 : vector<8x256xf32>
    %c0_17 = arith.constant 0 : index
    %c256_18 = arith.constant 256 : index
    %30 = vector.load %arg4[%c0_17, %c256_18] : memref<8x1024xf32, #tpu.memory_space<vmem>>, vector<8x256xf32>
    tpu.vector_store %arg4[%c0_17, %c256_18], %29 {strides = array<i32>} : memref<8x1024xf32, #tpu.memory_space<vmem>>, vector<8x256xf32>,
    %c0_19 = arith.constant 0 : index
    %c512_20 = arith.constant 512 : index
    %31 = vector.load %arg2[%c0_19, %c512_20] : memref<8x1024xf32, #tpu.memory_space<vmem>>, vector<8x256xf32>
    %32 = arith.mulf %31, %23 : vector<8x256xf32>
    %c0_21 = arith.constant 0 : index
    %c512_22 = arith.constant 512 : index
    %33 = vector.load %arg4[%c0_21, %c512_22] : memref<8x1024xf32, #tpu.memory_space<vmem>>, vector<8x256xf32>
    tpu.vector_store %arg4[%c0_21, %c512_22], %32 {strides = array<i32>} : memref<8x1024xf32, #tpu.memory_space<vmem>>, vector<8x256xf32>,
    %c0_23 = arith.constant 0 : index
    %c768_24 = arith.constant 768 : index
    %34 = vector.load %arg2[%c0_23, %c768_24] : memref<8x1024xf32, #tpu.memory_space<vmem>>, vector<8x256xf32>
    %35 = arith.mulf %34, %23 : vector<8x256xf32>
    %c0_25 = arith.constant 0 : index
    %c768_26 = arith.constant 768 : index
    %36 = vector.load %arg4[%c0_25, %c768_26] : memref<8x1024xf32, #tpu.memory_space<vmem>>, vector<8x256xf32>
    tpu.vector_store %arg4[%c0_25, %c768_26], %35 {strides = array<i32>} : memref<8x1024xf32, #tpu.memory_space<vmem>>, vector<8x256xf32>,
    return
  }
  func.func @transform_0(%arg0: i32) -> i32 {
    %c0_i32 = arith.constant 0 : i32
    %c0_i32_0 = arith.constant 0 : i32
    return %c0_i32 : i32
  }
  func.func @transform_1(%arg0: i32) -> (i32, i32) {
    %c0_i32 = arith.constant 0 : i32
    %c0_i32_0 = arith.constant 0 : i32
    return %arg0, %c0_i32 : i32, i32
  }
  func.func @transform_2(%arg0: i32) -> (i32, i32) {
    %c0_i32 = arith.constant 0 : i32
    %c0_i32_0 = arith.constant 0 : i32
    %c0_i32_1 = arith.constant 0 : i32
    return %c0_i32, %c0_i32_0 : i32, i32
  }
  func.func @transform_3(%arg0: i32) -> (i32, i32) {
    %c0_i32 = arith.constant 0 : i32
    %c0_i32_0 = arith.constant 0 : i32
    return %arg0, %c0_i32 : i32, i32
  }
  func.func @transform_4(%arg0: i32) -> (i32, i32) {
    %c0_i32 = arith.constant 0 : i32
    %c0_i32_0 = arith.constant 0 : i32
    return %arg0, %c0_i32 : i32, i32
  }
}

</mosaic_0001>

<bundles_post_ra>
// kernel: tpu_custom_call.1
= control target key start
LH: loop header
LB: loop body
LE: loop exit
PB: predicated region body
PF: predicated region fallthrough
CT: control target
= control target key end

     0   :  { %11 = vsyncpa [#allocation4], 0  ;;  %s1026_s0 = inlined_call_operand.<no memory space> [shape: f32[1], index: 0, kind: input, shape index: {}]   ;;  %s1027_s1 = inlined_call_operand.hbm [shape: f32[8,1024], index: 1, kind: input, shape index: {}]   ;;  %s1028_s2 = inlined_call_operand.hbm [shape: bf16[512,256], index: 2, kind: input, shape index: {}]   ;;  %s1029_s3 = inlined_call_operand.hbm [shape: f32[8,1024], index: 3, kind: output, shape index: {0}]   ;;  %s1030_s4 = inlined_call_operand.hbm [shape: f32[8,256], index: 4, kind: output, shape index: {1}]  }
   0x1   :  { %12 = vsyncpa [#allocation7], 0 }
   0x2   :  { %13 = vsyncpa [#allocation5], 0 }
   0x3   :  { %14 = vsyncpa [#allocation10], 0  ;;  %s883_s15 = smov [#allocation3]   ;;  %s884_s17 = smov [#allocation6]  }
   0x4   :  { %s23_s16 = sshll.u32 %s883_s15, 4  ;;  %s32_s18 = sshll.u32 %s884_s17, 4  ;;  %s24_s16 = int_to_ptr.vmem [resolvable:$true] %s23_s16  ;;  %s914_s18 = int_to_ptr.vmem [resolvable:$true] %s32_s18 }
   0x5   :  { %s787_s21 = scalar_lea.hbm %s1027_s1, 1024 }
   0x6   :  { %p788_p0 = scmp.ne.s32.totalorder %s1027_s1, %s787_s21  ;;  %p791_p1 = scmp.lt.u32.totalorder %s787_s21, %s1027_s1 }
   0x8   :  { %p793_p2 = pnand %p791_p1, %p788_p0 }
   0xa   :  { %796 = shalt.err (!%p793_p2)
}
   0xb   :  { %s797_s26 = scalar_lea.vmem %s24_s16, 1024  ;;  %p802_p4 = scmp.lt.s32.totalorder %s24_s16, %s24_s16 }
   0xc   :  { %p798_p3 = scmp.ne.s32.totalorder %s24_s16, %s797_s26  ;;  %p803_p5 = scmp.lt.s32.totalorder %s797_s26, %s797_s26 }
   0xe   :  { %p804_p6 = por %p803_p5, %p802_p4 }
  0x10   :  { %p805_p7 = pnand %p804_p6, %p798_p3 }
  0x12   :  { %808 = shalt.err (!%p805_p7)
}
  0x13   :  { %26 = dma.hbm_to_vmem [thread:$0]  %s1027_s1, 1024, %s24_s16, [#allocation4]  }
  0x14   :  { %s809_s5 = scalar_lea.hbm %s1028_s2, 8192 }
  0x15   :  { %p810_p8 = scmp.ne.s32.totalorder %s1028_s2, %s809_s5  ;;  %p813_p9 = scmp.lt.u32.totalorder %s809_s5, %s1028_s2 }
  0x17   :  { %p815_p10 = pnand %p813_p9, %p810_p8 }
  0x19   :  { %818 = shalt.err (!%p815_p10)
}
  0x1a   :  { %s819_s10 = scalar_lea.vmem %s914_s18, 8192  ;;  %p824_p12 = scmp.lt.s32.totalorder %s914_s18, %s914_s18 }
  0x1b   :  { %p820_p11 = scmp.ne.s32.totalorder %s914_s18, %s819_s10  ;;  %p825_p13 = scmp.lt.s32.totalorder %s819_s10, %s819_s10 }
  0x1d   :  { %p826_p0 = por %p825_p13, %p824_p12 }
  0x1f   :  { %p827_p1 = pnand %p826_p0, %p820_p11 }
  0x21   :  { %830 = shalt.err (!%p827_p1)
}
  0x22   :  { %s885_s1 = smov 128   ;;  %s886_s11 = smov 8  }
  0x23   :  { %38 = dma.hbm_to_vmem [thread:$0]  %s1028_s2, 8192, %s914_s18, [#allocation7], %s885_s1, %s885_s1, %s886_s11  }
  0x24   :  { %875 = dma.done.wait [#allocation4], 1024  }
  0x25   :  { %876 = vsyncadd [#allocation4], 4294966272 }
  0x26   :  { %877 = dma.done.wait [#allocation7], 8192  }
  0x27   :  { %878 = vsyncadd [#allocation7], 4294959104  ;;  %v683_v0 = vld [vmem:[#allocation6 + $0x4] ss:$8 sps:$4 sm:$0xff]   ;;  %v687_v2 = vld [vmem:[#allocation6] ss:$8 sps:$4 sm:$0xff]  }
  0x28   :  { %v685_v1 = vld [vmem:[#allocation6 + $0x104] ss:$8 sps:$4 sm:$0xff]   ;;  %457 = vmatprep.subr.bf16.mxu1 %v683_v0  ;;  %v688_v3 = vld [vmem:[#allocation6 + $0x100] ss:$8 sps:$4 sm:$0xff]   ;;  %v689_v4 = vld [vmem:[#allocation6 + $0x14] ss:$8 sps:$4 sm:$0xff]  }
  0x29   :  { %498 = vmatprep.subr.bf16.mxu0 %v685_v1  ;;  %458 = vmatpush1.bf16.msra.mxu1 %v687_v2  ;;  %v691_v5 = vld [vmem:[#allocation6 + $0x114] ss:$8 sps:$4 sm:$0xff]   ;;  %v693_v6 = vld [vmem:[#allocation6 + $0x10] ss:$8 sps:$4 sm:$0xff]   ;;  %v695_v8 = vld [vmem:[#allocation6 + $0x24] ss:$8 sps:$4 sm:$0xff]  }
  0x2a   :  { %499 = vmatpush1.bf16.msra.mxu0 %v688_v3  ;;  %459 = vmatprep.subr.bf16.mxu1 %v689_v4  ;;  %v694_v7 = vld [vmem:[#allocation6 + $0x110] ss:$8 sps:$4 sm:$0xff]   ;;  %v697_v9 = vld [vmem:[#allocation6 + $0x124] ss:$8 sps:$4 sm:$0xff]   ;;  %v699_v10 = vld [vmem:[#allocation6 + $0x20] ss:$8 sps:$4 sm:$0xff]  }
  0x2b   :  { %500 = vmatprep.subr.bf16.mxu0 %v691_v5  ;;  %v700_v11 = vld [vmem:[#allocation6 + $0x120] ss:$8 sps:$4 sm:$0xff]   ;;  %v701_v12 = vld [vmem:[#allocation6 + $0x34] ss:$8 sps:$4 sm:$0xff]   ;;  %v705_v14 = vld [vmem:[#allocation6 + $0x30] ss:$8 sps:$4 sm:$0xff]  }
  0x2c   :  { %v703_v13 = vld [vmem:[#allocation6 + $0x134] ss:$8 sps:$4 sm:$0xff]   ;;  %v706_v15 = vld [vmem:[#allocation6 + $0x130] ss:$8 sps:$4 sm:$0xff]   ;;  %v707_v16 = vld [vmem:[#allocation6 + $0x44] ss:$8 sps:$4 sm:$0xff]  }
  0x2d   :  { %460 = vmatpush1.bf16.msra.mxu1 %v693_v6  ;;  %v709_v17 = vld [vmem:[#allocation6 + $0x144] ss:$8 sps:$4 sm:$0xff]   ;;  %v711_v18 = vld [vmem:[#allocation6 + $0x40] ss:$8 sps:$4 sm:$0xff]   ;;  %v713_v20 = vld [vmem:[#allocation6 + $0x54] ss:$8 sps:$4 sm:$0xff]  }
  0x2e   :  { %501 = vmatpush1.bf16.msra.mxu0 %v694_v7  ;;  %461 = vmatprep.subr.bf16.mxu1 %v695_v8  ;;  %v712_v19 = vld [vmem:[#allocation6 + $0x140] ss:$8 sps:$4 sm:$0xff]   ;;  %v715_v21 = vld [vmem:[#allocation6 + $0x154] ss:$8 sps:$4 sm:$0xff]   ;;  %v717_v22 = vld [vmem:[#allocation6 + $0x50] ss:$8 sps:$4 sm:$0xff]  }
  0x2f   :  { %502 = vmatprep.subr.bf16.mxu0 %v697_v9  ;;  %v718_v23 = vld [vmem:[#allocation6 + $0x150] ss:$8 sps:$4 sm:$0xff]   ;;  %v719_v24 = vld [vmem:[#allocation6 + $0x64] ss:$8 sps:$4 sm:$0xff]   ;;  %v723_v26 = vld [vmem:[#allocation6 + $0x60] ss:$8 sps:$4 sm:$0xff]  }
  0x30   :  { %v721_v25 = vld [vmem:[#allocation6 + $0x164] ss:$8 sps:$4 sm:$0xff]   ;;  %v724_v27 = vld [vmem:[#allocation6 + $0x160] ss:$8 sps:$4 sm:$0xff]   ;;  %v725_v28 = vld [vmem:[#allocation6 + $0x74] ss:$8 sps:$4 sm:$0xff]  }
  0x31   :  { %462 = vmatpush1.bf16.msra.mxu1 %v699_v10  ;;  %v727_v29 = vld [vmem:[#allocation6 + $0x174] ss:$8 sps:$4 sm:$0xff]   ;;  %v729_v30 = vld [vmem:[#allocation6 + $0x70] ss:$8 sps:$4 sm:$0xff]   ;;  %v731_v32 = vld [vmem:[#allocation6 + $0x84] ss:$8 sps:$4 sm:$0xff]  }
  0x32   :  { %503 = vmatpush1.bf16.msra.mxu0 %v700_v11  ;;  %463 = vmatprep.subr.bf16.mxu1 %v701_v12  ;;  %v730_v31 = vld [vmem:[#allocation6 + $0x170] ss:$8 sps:$4 sm:$0xff]   ;;  %v733_v33 = vld [vmem:[#allocation6 + $0x184] ss:$8 sps:$4 sm:$0xff]   ;;  %v735_v34 = vld [vmem:[#allocation6 + $0x80] ss:$8 sps:$4 sm:$0xff]  }
  0x33   :  { %504 = vmatprep.subr.bf16.mxu0 %v703_v13  ;;  %v736_v35 = vld [vmem:[#allocation6 + $0x180] ss:$8 sps:$4 sm:$0xff]   ;;  %v737_v36 = vld [vmem:[#allocation6 + $0x94] ss:$8 sps:$4 sm:$0xff]   ;;  %v741_v38 = vld [vmem:[#allocation6 + $0x90] ss:$8 sps:$4 sm:$0xff]  }
  0x34   :  { %v739_v37 = vld [vmem:[#allocation6 + $0x194] ss:$8 sps:$4 sm:$0xff]   ;;  %v742_v39 = vld [vmem:[#allocation6 + $0x190] ss:$8 sps:$4 sm:$0xff]   ;;  %v743_v40 = vld [vmem:[#allocation6 + $0xa4] ss:$8 sps:$4 sm:$0xff]  }
  0x35   :  { %464 = vmatpush1.bf16.msra.mxu1 %v705_v14  ;;  %v745_v41 = vld [vmem:[#allocation6 + $0x1a4] ss:$8 sps:$4 sm:$0xff]   ;;  %v747_v42 = vld [vmem:[#allocation6 + $0xa0] ss:$8 sps:$4 sm:$0xff]   ;;  %v749_v44 = vld [vmem:[#allocation6 + $0xb4] ss:$8 sps:$4 sm:$0xff]  }
  0x36   :  { %505 = vmatpush1.bf16.msra.mxu0 %v706_v15  ;;  %465 = vmatprep.subr.bf16.mxu1 %v707_v16  ;;  %v748_v43 = vld [vmem:[#allocation6 + $0x1a0] ss:$8 sps:$4 sm:$0xff]   ;;  %v751_v45 = vld [vmem:[#allocation6 + $0x1b4] ss:$8 sps:$4 sm:$0xff]   ;;  %v753_v47 = vld [vmem:[#allocation6 + $0xb0] ss:$8 sps:$4 sm:$0xff]  }
  0x37   :  { %506 = vmatprep.subr.bf16.mxu0 %v709_v17  ;;  %v945_v46 = vld [vmem:[#allocation3 + $0x8] sm:$0xff]  ;;  %v947_v48 = vld [vmem:[#allocation3 + $0x18] sm:$0xff]  ;;  %v955_v53 = vld [vmem:[#allocation3] sm:$0xff]  ;;  %s888_s16 = smov [#allocation8]  }
  0x38   :  { %v949_v49 = vld [vmem:[#allocation3 + $0x28] sm:$0xff]  ;;  %v754_v50 = vld [vmem:[#allocation6 + $0x1b0] ss:$8 sps:$4 sm:$0xff]   ;;  %v50_v51 = vmax.f32 %v945_v46, %v947_v48  ;;  %v52_v52 = vadd.f32 %v947_v48, %v945_v46  ;;  %v967_v1 = vld [vmem:[#allocation3 + $0x20] sm:$0xff]  ;;  %s583_s17 = sshll.u32 %s888_s16, 4  ;;  %s990_s17 = int_to_ptr.vmem [resolvable:$true] %s583_s17 }
  0x39   :  { %466 = vmatpush1.bf16.msra.mxu1 %v711_v18  ;;  %v957_v54 = vld [vmem:[#allocation3 + $0x10] sm:$0xff]  ;;  %v755_v55 = vld [vmem:[#allocation6 + $0xc4] ss:$8 sps:$4 sm:$0xff]   ;;  %v959_v57 = vld [vmem:[#allocation3 + $0x38] sm:$0xff] }
  0x3a   :  { %507 = vmatpush1.bf16.msra.mxu0 %v712_v19  ;;  %467 = vmatprep.subr.bf16.mxu1 %v713_v20  ;;  %v757_v56 = vld [vmem:[#allocation6 + $0x1c4] ss:$8 sps:$4 sm:$0xff]   ;;  %v56_v58 = vmax.f32 %v50_v51, %v949_v49  ;;  %v58_v59 = vadd.f32 %v949_v49, %v52_v52  ;;  %v51_v60 = vadd.f32 %v957_v54, %v955_v53  ;;  %v759_v61 = vld [vmem:[#allocation6 + $0xc0] ss:$8 sps:$4 sm:$0xff]   ;;  %v761_v2 = vld [vmem:[#allocation6 + $0xd4] ss:$8 sps:$4 sm:$0xff]  }
  0x3b   :  { %508 = vmatprep.subr.bf16.mxu0 %v715_v21  ;;  %v760_v62 = vld [vmem:[#allocation6 + $0x1c0] ss:$8 sps:$4 sm:$0xff]   ;;  %v763_v3 = vld [vmem:[#allocation6 + $0x1d4] ss:$8 sps:$4 sm:$0xff]   ;;  %v49_v6 = vmax.f32 %v955_v53, %v957_v54  ;;  %v765_v8 = vld [vmem:[#allocation6 + $0xd0] ss:$8 sps:$4 sm:$0xff]  }
  0x3c   :  { %v62_v63 = vmax.f32 %v56_v58, %v959_v57  ;;  %v64_v0 = vadd.f32 %v959_v57, %v58_v59  ;;  %v57_v7 = vadd.f32 %v967_v1, %v51_v60  ;;  %v766_v9 = vld [vmem:[#allocation6 + $0x1d0] ss:$8 sps:$4 sm:$0xff]   ;;  %v767_v12 = vld [vmem:[#allocation6 + $0xe4] ss:$8 sps:$4 sm:$0xff]   ;;  %v771_v16 = vld [vmem:[#allocation6 + $0xe0] ss:$8 sps:$4 sm:$0xff]  }
  0x3d   :  { %468 = vmatpush1.bf16.msra.mxu1 %v717_v22  ;;  %v972_v11 = vld [vmem:[#allocation3 + $0x30] sm:$0xff]  ;;  %v769_v13 = vld [vmem:[#allocation6 + $0x1e4] ss:$8 sps:$4 sm:$0xff]   ;;  %v55_v14 = vmax.f32 %v49_v6, %v967_v1  ;;  %v772_v17 = vld [vmem:[#allocation6 + $0x1e0] ss:$8 sps:$4 sm:$0xff]  }
  0x3e   :  { %509 = vmatpush1.bf16.msra.mxu0 %v718_v23  ;;  %469 = vmatprep.subr.bf16.mxu1 %v719_v24  ;;  %v68_v4 = vpack.c.bf16 %v62_v63, %v62_v63  ;;  %v66_v5 = vmul.f32 0.25, %v64_v0  ;;  %v63_v15 = vadd.f32 %v972_v11, %v57_v7  ;;  %v773_v18 = vld [vmem:[#allocation6 + $0xf4] ss:$8 sps:$4 sm:$0xff]   ;;  %v777_v22 = vld [vmem:[#allocation6 + $0xf0] ss:$8 sps:$4 sm:$0xff]  }
  0x3f   :  { %510 = vmatprep.subr.bf16.mxu0 %v721_v25  ;;  %v775_v19 = vld [vmem:[#allocation6 + $0x1f4] ss:$8 sps:$4 sm:$0xff]   ;;  %v61_v20 = vmax.f32 %v55_v14, %v972_v11  ;;  %v778_v23 = vld [vmem:[#allocation6 + $0x1f0] ss:$8 sps:$4 sm:$0xff]  }
  0x40   :  { %v70_v10 = vpack.c.bf16 %v66_v5, %v66_v5  ;;  %489 = vmatprep.mubr.bf16.mxu1 %v68_v4  ;;  %v65_v21 = vmul.f32 0.25, %v63_v15 }
  0x41   :  { %470 = vmatpush1.bf16.msra.mxu1 %v723_v26  ;;  %v67_v24 = vpack.c.bf16 %v61_v20, %v61_v20  ;;  %v136_v26 = vstv %s1026_s0  ;;  %s887_s0 = smov [#allocation9]  }
  0x42   :  { %511 = vmatpush1.bf16.msra.mxu0 %v724_v27  ;;  %471 = vmatprep.subr.bf16.mxu1 %v725_v28  ;;  %v69_v25 = vpack.c.bf16 %v65_v21, %v65_v21  ;;  %s593_s15 = sshll.u32 %s887_s0, 4  ;;  %s980_s15 = int_to_ptr.vmem [resolvable:$true] %s593_s15 }
  0x43   :  { %512 = vmatprep.subr.bf16.mxu0 %v727_v29  ;;  %530 = vmatprep.mubr.bf16.mxu0 %v70_v10  ;;  %s831_s18 = scalar_lea.vmem %s980_s15, 256  ;;  %p836_p3 = scmp.lt.s32.totalorder %s980_s15, %s980_s15 }
  0x44   :  { %p832_p2 = scmp.ne.s32.totalorder %s980_s15, %s831_s18  ;;  %p837_p4 = scmp.lt.s32.totalorder %s831_s18, %s831_s18 }
  0x45   :  { %472 = vmatpush1.bf16.msra.mxu1 %v729_v30 }
  0x46   :  { %513 = vmatpush1.bf16.msra.mxu0 %v730_v31  ;;  %473 = vmatprep.subr.bf16.mxu1 %v731_v32  ;;  %p838_p5 = por %p837_p4, %p836_p3 }
  0x47   :  { %514 = vmatprep.subr.bf16.mxu0 %v733_v33 }
  0x48   :  { %p839_p6 = pnand %p838_p5, %p832_p2 }
  0x49   :  { %474 = vmatpush1.bf16.msra.mxu1 %v735_v34 }
  0x4a   :  { %515 = vmatpush1.bf16.msra.mxu0 %v736_v35  ;;  %475 = vmatprep.subr.bf16.mxu1 %v737_v36 }
  0x4b   :  { %516 = vmatprep.subr.bf16.mxu0 %v739_v37 }
  0x4d   :  { %476 = vmatpush1.bf16.msra.mxu1 %v741_v38 }
  0x4e   :  { %517 = vmatpush1.bf16.msra.mxu0 %v742_v39  ;;  %477 = vmatprep.subr.bf16.mxu1 %v743_v40 }
  0x4f   :  { %518 = vmatprep.subr.bf16.mxu0 %v745_v41 }
  0x51   :  { %478 = vmatpush1.bf16.msra.mxu1 %v747_v42 }
  0x52   :  { %519 = vmatpush1.bf16.msra.mxu0 %v748_v43  ;;  %479 = vmatprep.subr.bf16.mxu1 %v749_v44 }
  0x53   :  { %520 = vmatprep.subr.bf16.mxu0 %v751_v45 }
  0x55   :  { %480 = vmatpush1.bf16.msra.mxu1 %v753_v47 }
  0x56   :  { %521 = vmatpush1.bf16.msra.mxu0 %v754_v50  ;;  %481 = vmatprep.subr.bf16.mxu1 %v755_v55 }
  0x57   :  { %522 = vmatprep.subr.bf16.mxu0 %v757_v56 }
  0x59   :  { %482 = vmatpush1.bf16.msra.mxu1 %v759_v61 }
  0x5a   :  { %523 = vmatpush1.bf16.msra.mxu0 %v760_v62  ;;  %483 = vmatprep.subr.bf16.mxu1 %v761_v2 }
  0x5b   :  { %524 = vmatprep.subr.bf16.mxu0 %v763_v3 }
  0x5d   :  { %484 = vmatpush1.bf16.msra.mxu1 %v765_v8 }
  0x5e   :  { %525 = vmatpush1.bf16.msra.mxu0 %v766_v9  ;;  %485 = vmatprep.subr.bf16.mxu1 %v767_v12 }
  0x5f   :  { %526 = vmatprep.subr.bf16.mxu0 %v769_v13 }
  0x61   :  { %486 = vmatpush1.bf16.msra.mxu1 %v771_v16 }
  0x62   :  { %527 = vmatpush1.bf16.msra.mxu0 %v772_v17  ;;  %487 = vmatprep.subr.bf16.mxu1 %v773_v18 }
  0x63   :  { %528 = vmatprep.subr.bf16.mxu0 %v775_v19 }
  0x65   :  { %488 = vmatpush1.bf16.msra.mxu1 %v777_v22 }
  0x66   :  { %529 = vmatpush1.bf16.msra.mxu0 %v778_v23 }
  0x68   :  { %490 = vmatmul.mubr.bf16.vlgmr.msra.gmra.mrb[0].mxu1 %v67_v24 }
  0x69   :  { %531 = vmatmul.mubr.bf16.vlgmr.msra.gmra.mrb[0].mxu0 %v69_v25 }
 0x13b   :  { %v491_v27 = vpop.f32.mrb[0].mxu1 }
 0x13c   :  { %v532_v28 = vpop.f32.mrb[0].mxu0  ;;  %v492_v29 = vadd.f32 %v491_v27, %v136_v26  ;;  %v493_v30 = vpop.f32.mrb[1].mxu1 }
 0x13d   :  { %v534_v31 = vpop.f32.mrb[1].mxu0  ;;  %v494_v32 = vadd.f32 %v493_v30, %v136_v26  ;;  %v495_v33 = vpop.f32.mrb[2].mxu1 }
 0x13e   :  { %v536_v34 = vpop.f32.mrb[2].mxu0  ;;  %v533_v35 = vadd.f32 %v532_v28, %v492_v29  ;;  %v496_v36 = vpop.f32.mrb[3].mxu1 }
 0x13f   :  { %v537_v37 = vpop.f32.mrb[3].mxu0  ;;  %v535_v38 = vadd.f32 %v534_v31, %v494_v32 }
 0x140   :  { %v671_v39 = vmul.f32 -1.442695, %v533_v35 }
 0x141   :  { %v672_v40 = vmul.f32 -1.442695, %v535_v38 }
 0x142   :  { %779 = vpow2.f32 %v671_v39 }
 0x143   :  { %781 = vpow2.f32 %v672_v40 }
 0x14c   :  { %v780_v41 = vpop.eup %779 }
 0x14d   :  { %v782_v42 = vpop.eup %781  ;;  %v545_v43 = vadd.f32 1.0, %v780_v41 }
 0x14e   :  { %v546_v44 = vadd.f32 1.0, %v782_v42 }
 0x14f   :  { %783 = vrcp.f32 %v545_v43 }
 0x150   :  { %785 = vrcp.f32 %v546_v44 }
 0x159   :  { %v784_v45 = vpop.eup %783 }
 0x15a   :  { %v786_v47 = vpop.eup %785  ;;  %551 = vst [vmem:[#allocation9] sm:$0xff] %v784_v45  ;;  %v555_v50 = vmul.f32 %v784_v45, %v955_v53  ;;  %v561_v51 = vmul.f32 %v784_v45, %v957_v54  ;;  %v567_v52 = vmul.f32 %v784_v45, %v967_v1  ;;  %v573_v55 = vmul.f32 %v784_v45, %v972_v11 }
 0x15b   :  { %552 = vst [vmem:[#allocation9 + $0x8] sm:$0xff] %v786_v47  ;;  %v556_v56 = vmul.f32 %v786_v47, %v945_v46  ;;  %v562_v58 = vmul.f32 %v786_v47, %v947_v48  ;;  %v568_v59 = vmul.f32 %v786_v47, %v949_v49  ;;  %v574_v60 = vmul.f32 %v786_v47, %v959_v57 }
 0x15c   :  { %557 = vst [vmem:[#allocation8] sm:$0xff] %v555_v50  ;;  %563 = vst [vmem:[#allocation8 + $0x10] sm:$0xff] %v561_v51 }
 0x15d   :  { %569 = vst [vmem:[#allocation8 + $0x20] sm:$0xff] %v567_v52  ;;  %575 = vst [vmem:[#allocation8 + $0x30] sm:$0xff] %v573_v55 }
 0x15e   :  { %842 = shalt.err (!%p839_p6)
}
 0x15f   :  { %s843_s21 = scalar_lea.hbm %s1030_s4, 256 }
 0x160   :  { %p844_p7 = scmp.ne.s32.totalorder %s1030_s4, %s843_s21  ;;  %p847_p8 = scmp.lt.u32.totalorder %s843_s21, %s1030_s4 }
 0x162   :  { %p849_p9 = pnand %p847_p8, %p844_p7 }
 0x164   :  { %852 = shalt.err (!%p849_p9)
}
 0x165   :  { %596 = dma.vmem_to_hbm [thread:$0]  %s980_s15, 256, %s1030_s4, [#allocation10]   ;;  %558 = vst [vmem:[#allocation8 + $0x8] sm:$0xff] %v556_v56  ;;  %564 = vst [vmem:[#allocation8 + $0x18] sm:$0xff] %v562_v58 }
 0x166   :  { %570 = vst [vmem:[#allocation8 + $0x28] sm:$0xff] %v568_v59  ;;  %576 = vst [vmem:[#allocation8 + $0x38] sm:$0xff] %v574_v60  ;;  %s853_s28 = scalar_lea.vmem %s990_s17, 1024  ;;  %p858_p11 = scmp.lt.s32.totalorder %s990_s17, %s990_s17 }
 0x167   :  { %p854_p10 = scmp.ne.s32.totalorder %s990_s17, %s853_s28  ;;  %p859_p12 = scmp.lt.s32.totalorder %s853_s28, %s853_s28 }
 0x169   :  { %p860_p13 = por %p859_p12, %p858_p11 }
 0x16b   :  { %p861_p0 = pnand %p860_p13, %p854_p10 }
 0x16d   :  { %864 = shalt.err (!%p861_p0)
}
 0x16e   :  { %s865_s5 = scalar_lea.hbm %s1029_s3, 1024 }
 0x16f   :  { %p866_p1 = scmp.ne.s32.totalorder %s1029_s3, %s865_s5  ;;  %p869_p2 = scmp.lt.u32.totalorder %s865_s5, %s1029_s3 }
 0x171   :  { %p871_p3 = pnand %p869_p2, %p866_p1 }
 0x173   :  { %874 = shalt.err (!%p871_p3)
}
 0x174   :  { %586 = dma.vmem_to_hbm [thread:$0]  %s990_s17, 1024, %s1029_s3, [#allocation5]  }
 0x175   :  { %879 = dma.done.wait [#allocation5], 1024  }
 0x176   :  { %880 = vsyncadd [#allocation5], 4294966272 }
 0x177   :  { %881 = dma.done.wait [#allocation10], 256  }
 0x178   :  { %882 = vsyncadd [#allocation10], 4294967040 }
 0x179   :  { %603 = vsyncpa [#allocation4], 1 }
 0x17a   :  { %604 = vsyncpa [#allocation7], 1 }
 0x17b   :  { %605 = vsyncpa [#allocation5], 1 }
 0x17c   :  { %606 = vsyncpa [#allocation10], 1 }

// kernel: tpu_custom_call.1
= control target key start
LH: loop header
LB: loop body
LE: loop exit
PB: predicated region body
PF: predicated region fallthrough
CT: control target
= control target key end

     0   :  { %11 = vsyncpa [#allocation4], 0  ;;  %s1026_s0 = inlined_call_operand.<no memory space> [shape: f32[1], index: 0, kind: input, shape index: {}]   ;;  %s1027_s1 = inlined_call_operand.hbm [shape: f32[8,1024], index: 1, kind: input, shape index: {}]   ;;  %s1028_s2 = inlined_call_operand.hbm [shape: bf16[512,256], index: 2, kind: input, shape index: {}]   ;;  %s1029_s3 = inlined_call_operand.hbm [shape: f32[8,1024], index: 3, kind: output, shape index: {0}]   ;;  %s1030_s4 = inlined_call_operand.hbm [shape: f32[8,256], index: 4, kind: output, shape index: {1}]  }
   0x1   :  { %12 = vsyncpa [#allocation7], 0 }
   0x2   :  { %13 = vsyncpa [#allocation5], 0 }
   0x3   :  { %14 = vsyncpa [#allocation10], 0  ;;  %s883_s15 = smov [#allocation3]   ;;  %s884_s17 = smov [#allocation6]  }
   0x4   :  { %s23_s16 = sshll.u32 %s883_s15, 4  ;;  %s32_s18 = sshll.u32 %s884_s17, 4  ;;  %s24_s16 = int_to_ptr.vmem [resolvable:$true] %s23_s16  ;;  %s914_s18 = int_to_ptr.vmem [resolvable:$true] %s32_s18 }
   0x5   :  { %s787_s21 = scalar_lea.hbm %s1027_s1, 1024 }
   0x6   :  { %p788_p0 = scmp.ne.s32.totalorder %s1027_s1, %s787_s21  ;;  %p791_p1 = scmp.lt.u32.totalorder %s787_s21, %s1027_s1 }
   0x8   :  { %p793_p2 = pnand %p791_p1, %p788_p0 }
   0xa   :  { %796 = shalt.err (!%p793_p2)
}
   0xb   :  { %s797_s26 = scalar_lea.vmem %s24_s16, 1024  ;;  %p802_p4 = scmp.lt.s32.totalorder %s24_s16, %s24_s16 }
   0xc   :  { %p798_p3 = scmp.ne.s32.totalorder %s24_s16, %s797_s26  ;;  %p803_p5 = scmp.lt.s32.totalorder %s797_s26, %s797_s26 }
   0xe   :  { %p804_p6 = por %p803_p5, %p802_p4 }
  0x10   :  { %p805_p7 = pnand %p804_p6, %p798_p3 }
  0x12   :  { %808 = shalt.err (!%p805_p7)
}
  0x13   :  { %26 = dma.hbm_to_vmem [thread:$0]  %s1027_s1, 1024, %s24_s16, [#allocation4]  }
  0x14   :  { %s809_s5 = scalar_lea.hbm %s1028_s2, 8192 }
  0x15   :  { %p810_p8 = scmp.ne.s32.totalorder %s1028_s2, %s809_s5  ;;  %p813_p9 = scmp.lt.u32.totalorder %s809_s5, %s1028_s2 }
  0x17   :  { %p815_p10 = pnand %p813_p9, %p810_p8 }
  0x19   :  { %818 = shalt.err (!%p815_p10)
}
  0x1a   :  { %s819_s10 = scalar_lea.vmem %s914_s18, 8192  ;;  %p824_p12 = scmp.lt.s32.totalorder %s914_s18, %s914_s18 }
  0x1b   :  { %p820_p11 = scmp.ne.s32.totalorder %s914_s18, %s819_s10  ;;  %p825_p13 = scmp.lt.s32.totalorder %s819_s10, %s819_s10 }
  0x1d   :  { %p826_p0 = por %p825_p13, %p824_p12 }
  0x1f   :  { %p827_p1 = pnand %p826_p0, %p820_p11 }
  0x21   :  { %830 = shalt.err (!%p827_p1)
}
  0x22   :  { %s885_s1 = smov 128   ;;  %s886_s11 = smov 8  }
  0x23   :  { %38 = dma.hbm_to_vmem [thread:$0]  %s1028_s2, 8192, %s914_s18, [#allocation7], %s885_s1, %s885_s1, %s886_s11  }
  0x24   :  { %875 = dma.done.wait [#allocation4], 1024  }
  0x25   :  { %876 = vsyncadd [#allocation4], 4294966272 }
  0x26   :  { %877 = dma.done.wait [#allocation7], 8192  }
  0x27   :  { %878 = vsyncadd [#allocation7], 4294959104  ;;  %v683_v0 = vld [vmem:[#allocation6 + $0x4] ss:$8 sps:$4 sm:$0xff]   ;;  %v687_v2 = vld [vmem:[#allocation6] ss:$8 sps:$4 sm:$0xff]  }
  0x28   :  { %v685_v1 = vld [vmem:[#allocation6 + $0x104] ss:$8 sps:$4 sm:$0xff]   ;;  %457 = vmatprep.subr.bf16.mxu1 %v683_v0  ;;  %v688_v3 = vld [vmem:[#allocation6 + $0x100] ss:$8 sps:$4 sm:$0xff]   ;;  %v689_v4 = vld [vmem:[#allocation6 + $0x14] ss:$8 sps:$4 sm:$0xff]  }
  0x29   :  { %498 = vmatprep.subr.bf16.mxu0 %v685_v1  ;;  %458 = vmatpush1.bf16.msra.mxu1 %v687_v2  ;;  %v691_v5 = vld [vmem:[#allocation6 + $0x114] ss:$8 sps:$4 sm:$0xff]   ;;  %v693_v6 = vld [vmem:[#allocation6 + $0x10] ss:$8 sps:$4 sm:$0xff]   ;;  %v695_v8 = vld [vmem:[#allocation6 + $0x24] ss:$8 sps:$4 sm:$0xff]  }
  0x2a   :  { %499 = vmatpush1.bf16.msra.mxu0 %v688_v3  ;;  %459 = vmatprep.subr.bf16.mxu1 %v689_v4  ;;  %v694_v7 = vld [vmem:[#allocation6 + $0x110] ss:$8 sps:$4 sm:$0xff]   ;;  %v697_v9 = vld [vmem:[#allocation6 + $0x124] ss:$8 sps:$4 sm:$0xff]   ;;  %v699_v10 = vld [vmem:[#allocation6 + $0x20] ss:$8 sps:$4 sm:$0xff]  }
  0x2b   :  { %500 = vmatprep.subr.bf16.mxu0 %v691_v5  ;;  %v700_v11 = vld [vmem:[#allocation6 + $0x120] ss:$8 sps:$4 sm:$0xff]   ;;  %v701_v12 = vld [vmem:[#allocation6 + $0x34] ss:$8 sps:$4 sm:$0xff]   ;;  %v705_v14 = vld [vmem:[#allocation6 + $0x30] ss:$8 sps:$4 sm:$0xff]  }
  0x2c   :  { %v703_v13 = vld [vmem:[#allocation6 + $0x134] ss:$8 sps:$4 sm:$0xff]   ;;  %v706_v15 = vld [vmem:[#allocation6 + $0x130] ss:$8 sps:$4 sm:$0xff]   ;;  %v707_v16 = vld [vmem:[#allocation6 + $0x44] ss:$8 sps:$4 sm:$0xff]  }
  0x2d   :  { %460 = vmatpush1.bf16.msra.mxu1 %v693_v6  ;;  %v709_v17 = vld [vmem:[#allocation6 + $0x144] ss:$8 sps:$4 sm:$0xff]   ;;  %v711_v18 = vld [vmem:[#allocation6 + $0x40] ss:$8 sps:$4 sm:$0xff]   ;;  %v713_v20 = vld [vmem:[#allocation6 + $0x54] ss:$8 sps:$4 sm:$0xff]  }
  0x2e   :  { %501 = vmatpush1.bf16.msra.mxu0 %v694_v7  ;;  %461 = vmatprep.subr.bf16.mxu1 %v695_v8  ;;  %v712_v19 = vld [vmem:[#allocation6 + $0x140] ss:$8 sps:$4 sm:$0xff]   ;;  %v715_v21 = vld [vmem:[#allocation6 + $0x154] ss:$8 sps:$4 sm:$0xff]   ;;  %v717_v22 = vld [vmem:[#allocation6 + $0x50] ss:$8 sps:$4 sm:$0xff]  }
  0x2f   :  { %502 = vmatprep.subr.bf16.mxu0 %v697_v9  ;;  %v718_v23 = vld [vmem:[#allocation6 + $0x150] ss:$8 sps:$4 sm:$0xff]   ;;  %v719_v24 = vld [vmem:[#allocation6 + $0x64] ss:$8 sps:$4 sm:$0xff]   ;;  %v723_v26 = vld [vmem:[#allocation6 + $0x60] ss:$8 sps:$4 sm:$0xff]  }
  0x30   :  { %v721_v25 = vld [vmem:[#allocation6 + $0x164] ss:$8 sps:$4 sm:$0xff]   ;;  %v724_v27 = vld [vmem:[#allocation6 + $0x160] ss:$8 sps:$4 sm:$0xff]   ;;  %v725_v28 = vld [vmem:[#allocation6 + $0x74] ss:$8 sps:$4 sm:$0xff]  }
  0x31   :  { %462 = vmatpush1.bf16.msra.mxu1 %v699_v10  ;;  %v727_v29 = vld [vmem:[#allocation6 + $0x174] ss:$8 sps:$4 sm:$0xff]   ;;  %v729_v30 = vld [vmem:[#allocation6 + $0x70] ss:$8 sps:$4 sm:$0xff]   ;;  %v731_v32 = vld [vmem:[#allocation6 + $0x84] ss:$8 sps:$4 sm:$0xff]  }
  0x32   :  { %503 = vmatpush1.bf16.msra.mxu0 %v700_v11  ;;  %463 = vmatprep.subr.bf16.mxu1 %v701_v12  ;;  %v730_v31 = vld [vmem:[#allocation6 + $0x170] ss:$8 sps:$4 sm:$0xff]   ;;  %v733_v33 = vld [vmem:[#allocation6 + $0x184] ss:$8 sps:$4 sm:$0xff]   ;;  %v735_v34 = vld [vmem:[#allocation6 + $0x80] ss:$8 sps:$4 sm:$0xff]  }
  0x33   :  { %504 = vmatprep.subr.bf16.mxu0 %v703_v13  ;;  %v736_v35 = vld [vmem:[#allocation6 + $0x180] ss:$8 sps:$4 sm:$0xff]   ;;  %v737_v36 = vld [vmem:[#allocation6 + $0x94] ss:$8 sps:$4 sm:$0xff]   ;;  %v741_v38 = vld [vmem:[#allocation6 + $0x90] ss:$8 sps:$4 sm:$0xff]  }
  0x34   :  { %v739_v37 = vld [vmem:[#allocation6 + $0x194] ss:$8 sps:$4 sm:$0xff]   ;;  %v742_v39 = vld [vmem:[#allocation6 + $0x190] ss:$8 sps:$4 sm:$0xff]   ;;  %v743_v40 = vld [vmem:[#allocation6 + $0xa4] ss:$8 sps:$4 sm:$0xff]  }
  0x35   :  { %464 = vmatpush1.bf16.msra.mxu1 %v705_v14  ;;  %v745_v41 = vld [vmem:[#allocation6 + $0x1a4] ss:$8 sps:$4 sm:$0xff]   ;;  %v747_v42 = vld [vmem:[#allocation6 + $0xa0] ss:$8 sps:$4 sm:$0xff]   ;;  %v749_v44 = vld [vmem:[#allocation6 + $0xb4] ss:$8 sps:$4 sm:$0xff]  }
  0x36   :  { %505 = vmatpush1.bf16.msra.mxu0 %v706_v15  ;;  %465 = vmatprep.subr.bf16.mxu1 %v707_v16  ;;  %v748_v43 = vld [vmem:[#allocation6 + $0x1a0] ss:$8 sps:$4 sm:$0xff]   ;;  %v751_v45 = vld [vmem:[#allocation6 + $0x1b4] ss:$8 sps:$4 sm:$0xff]   ;;  %v753_v47 = vld [vmem:[#allocation6 + $0xb0] ss:$8 sps:$4 sm:$0xff]  }
  0x37   :  { %506 = vmatprep.subr.bf16.mxu0 %v709_v17  ;;  %v945_v46 = vld [vmem:[#allocation3 + $0x8] sm:$0xff]  ;;  %v947_v48 = vld [vmem:[#allocation3 + $0x18] sm:$0xff]  ;;  %v955_v53 = vld [vmem:[#allocation3] sm:$0xff]  ;;  %s888_s16 = smov [#allocation8]  }
  0x38   :  { %v949_v49 = vld [vmem:[#allocation3 + $0x28] sm:$0xff]  ;;  %v754_v50 = vld [vmem:[#allocation6 + $0x1b0] ss:$8 sps:$4 sm:$0xff]   ;;  %v50_v51 = vmax.f32 %v945_v46, %v947_v48  ;;  %v52_v52 = vadd.f32 %v947_v48, %v945_v46  ;;  %v967_v1 = vld [vmem:[#allocation3 + $0x20] sm:$0xff]  ;;  %s583_s17 = sshll.u32 %s888_s16, 4  ;;  %s990_s17 = int_to_ptr.vmem [resolvable:$true] %s583_s17 }
  0x39   :  { %466 = vmatpush1.bf16.msra.mxu1 %v711_v18  ;;  %v957_v54 = vld [vmem:[#allocation3 + $0x10] sm:$0xff]  ;;  %v755_v55 = vld [vmem:[#allocation6 + $0xc4] ss:$8 sps:$4 sm:$0xff]   ;;  %v959_v57 = vld [vmem:[#allocation3 + $0x38] sm:$0xff] }
  0x3a   :  { %507 = vmatpush1.bf16.msra.mxu0 %v712_v19  ;;  %467 = vmatprep.subr.bf16.mxu1 %v713_v20  ;;  %v757_v56 = vld [vmem:[#allocation6 + $0x1c4] ss:$8 sps:$4 sm:$0xff]   ;;  %v56_v58 = vmax.f32 %v50_v51, %v949_v49  ;;  %v58_v59 = vadd.f32 %v949_v49, %v52_v52  ;;  %v51_v60 = vadd.f32 %v957_v54, %v955_v53  ;;  %v759_v61 = vld [vmem:[#allocation6 + $0xc0] ss:$8 sps:$4 sm:$0xff]   ;;  %v761_v2 = vld [vmem:[#allocation6 + $0xd4] ss:$8 sps:$4 sm:$0xff]  }
  0x3b   :  { %508 = vmatprep.subr.bf16.mxu0 %v715_v21  ;;  %v760_v62 = vld [vmem:[#allocation6 + $0x1c0] ss:$8 sps:$4 sm:$0xff]   ;;  %v763_v3 = vld [vmem:[#allocation6 + $0x1d4] ss:$8 sps:$4 sm:$0xff]   ;;  %v49_v6 = vmax.f32 %v955_v53, %v957_v54  ;;  %v765_v8 = vld [vmem:[#allocation6 + $0xd0] ss:$8 sps:$4 sm:$0xff]  }
  0x3c   :  { %v62_v63 = vmax.f32 %v56_v58, %v959_v57  ;;  %v64_v0 = vadd.f32 %v959_v57, %v58_v59  ;;  %v57_v7 = vadd.f32 %v967_v1, %v51_v60  ;;  %v766_v9 = vld [vmem:[#allocation6 + $0x1d0] ss:$8 sps:$4 sm:$0xff]   ;;  %v767_v12 = vld [vmem:[#allocation6 + $0xe4] ss:$8 sps:$4 sm:$0xff]   ;;  %v771_v16 = vld [vmem:[#allocation6 + $0xe0] ss:$8 sps:$4 sm:$0xff]  }
  0x3d   :  { %468 = vmatpush1.bf16.msra.mxu1 %v717_v22  ;;  %v972_v11 = vld [vmem:[#allocation3 + $0x30] sm:$0xff]  ;;  %v769_v13 = vld [vmem:[#allocation6 + $0x1e4] ss:$8 sps:$4 sm:$0xff]   ;;  %v55_v14 = vmax.f32 %v49_v6, %v967_v1  ;;  %v772_v17 = vld [vmem:[#allocation6 + $0x1e0] ss:$8 sps:$4 sm:$0xff]  }
  0x3e   :  { %509 = vmatpush1.bf16.msra.mxu0 %v718_v23  ;;  %469 = vmatprep.subr.bf16.mxu1 %v719_v24  ;;  %v68_v4 = vpack.c.bf16 %v62_v63, %v62_v63  ;;  %v66_v5 = vmul.f32 0.25, %v64_v0  ;;  %v63_v15 = vadd.f32 %v972_v11, %v57_v7  ;;  %v773_v18 = vld [vmem:[#allocation6 + $0xf4] ss:$8 sps:$4 sm:$0xff]   ;;  %v777_v22 = vld [vmem:[#allocation6 + $0xf0] ss:$8 sps:$4 sm:$0xff]  }
  0x3f   :  { %510 = vmatprep.subr.bf16.mxu0 %v721_v25  ;;  %v775_v19 = vld [vmem:[#allocation6 + $0x1f4] ss:$8 sps:$4 sm:$0xff]   ;;  %v61_v20 = vmax.f32 %v55_v14, %v972_v11  ;;  %v778_v23 = vld [vmem:[#allocation6 + $0x1f0] ss:$8 sps:$4 sm:$0xff]  }
  0x40   :  { %v70_v10 = vpack.c.bf16 %v66_v5, %v66_v5  ;;  %489 = vmatprep.mubr.bf16.mxu1 %v68_v4  ;;  %v65_v21 = vmul.f32 0.25, %v63_v15 }
  0x41   :  { %470 = vmatpush1.bf16.msra.mxu1 %v723_v26  ;;  %v67_v24 = vpack.c.bf16 %v61_v20, %v61_v20  ;;  %v136_v26 = vstv %s1026_s0  ;;  %s887_s0 = smov [#allocation9]  }
  0x42   :  { %511 = vmatpush1.bf16.msra.mxu0 %v724_v27  ;;  %471 = vmatprep.subr.bf16.mxu1 %v725_v28  ;;  %v69_v25 = vpack.c.bf16 %v65_v21, %v65_v21  ;;  %s593_s15 = sshll.u32 %s887_s0, 4  ;;  %s980_s15 = int_to_ptr.vmem [resolvable:$true] %s593_s15 }
  0x43   :  { %512 = vmatprep.subr.bf16.mxu0 %v727_v29  ;;  %530 = vmatprep.mubr.bf16.mxu0 %v70_v10  ;;  %s831_s18 = scalar_lea.vmem %s980_s15, 256  ;;  %p836_p3 = scmp.lt.s32.totalorder %s980_s15, %s980_s15 }
  0x44   :  { %p832_p2 = scmp.ne.s32.totalorder %s980_s15, %s831_s18  ;;  %p837_p4 = scmp.lt.s32.totalorder %s831_s18, %s831_s18 }
  0x45   :  { %472 = vmatpush1.bf16.msra.mxu1 %v729_v30 }
  0x46   :  { %513 = vmatpush1.bf16.msra.mxu0 %v730_v31  ;;  %473 = vmatprep.subr.bf16.mxu1 %v731_v32  ;;  %p838_p5 = por %p837_p4, %p836_p3 }
  0x47   :  { %514 = vmatprep.subr.bf16.mxu0 %v733_v33 }
  0x48   :  { %p839_p6 = pnand %p838_p5, %p832_p2 }
  0x49   :  { %474 = vmatpush1.bf16.msra.mxu1 %v735_v34 }
  0x4a   :  { %515 = vmatpush1.bf16.msra.mxu0 %v736_v35  ;;  %475 = vmatprep.subr.bf16.mxu1 %v737_v36 }
  0x4b   :  { %516 = vmatprep.subr.bf16.mxu0 %v739_v37 }
  0x4d   :  { %476 = vmatpush1.bf16.msra.mxu1 %v741_v38 }
  0x4e   :  { %517 = vmatpush1.bf16.msra.mxu0 %v742_v39  ;;  %477 = vmatprep.subr.bf16.mxu1 %v743_v40 }
  0x4f   :  { %518 = vmatprep.subr.bf16.mxu0 %v745_v41 }
  0x51   :  { %478 = vmatpush1.bf16.msra.mxu1 %v747_v42 }
  0x52   :  { %519 = vmatpush1.bf16.msra.mxu0 %v748_v43  ;;  %479 = vmatprep.subr.bf16.mxu1 %v749_v44 }
  0x53   :  { %520 = vmatprep.subr.bf16.mxu0 %v751_v45 }
  0x55   :  { %480 = vmatpush1.bf16.msra.mxu1 %v753_v47 }
  0x56   :  { %521 = vmatpush1.bf16.msra.mxu0 %v754_v50  ;;  %481 = vmatprep.subr.bf16.mxu1 %v755_v55 }
  0x57   :  { %522 = vmatprep.subr.bf16.mxu0 %v757_v56 }
  0x59   :  { %482 = vmatpush1.bf16.msra.mxu1 %v759_v61 }
  0x5a   :  { %523 = vmatpush1.bf16.msra.mxu0 %v760_v62  ;;  %483 = vmatprep.subr.bf16.mxu1 %v761_v2 }
  0x5b   :  { %524 = vmatprep.subr.bf16.mxu0 %v763_v3 }
  0x5d   :  { %484 = vmatpush1.bf16.msra.mxu1 %v765_v8 }
  0x5e   :  { %525 = vmatpush1.bf16.msra.mxu0 %v766_v9  ;;  %485 = vmatprep.subr.bf16.mxu1 %v767_v12 }
  0x5f   :  { %526 = vmatprep.subr.bf16.mxu0 %v769_v13 }
  0x61   :  { %486 = vmatpush1.bf16.msra.mxu1 %v771_v16 }
  0x62   :  { %527 = vmatpush1.bf16.msra.mxu0 %v772_v17  ;;  %487 = vmatprep.subr.bf16.mxu1 %v773_v18 }
  0x63   :  { %528 = vmatprep.subr.bf16.mxu0 %v775_v19 }
  0x65   :  { %488 = vmatpush1.bf16.msra.mxu1 %v777_v22 }
  0x66   :  { %529 = vmatpush1.bf16.msra.mxu0 %v778_v23 }
  0x68   :  { %490 = vmatmul.mubr.bf16.vlgmr.msra.gmra.mrb[0].mxu1 %v67_v24 }
  0x69   :  { %531 = vmatmul.mubr.bf16.vlgmr.msra.gmra.mrb[0].mxu0 %v69_v25 }
 0x13b   :  { %v491_v27 = vpop.f32.mrb[0].mxu1 }
 0x13c   :  { %v532_v28 = vpop.f32.mrb[0].mxu0  ;;  %v492_v29 = vadd.f32 %v491_v27, %v136_v26  ;;  %v493_v30 = vpop.f32.mrb[1].mxu1 }
 0x13d   :  { %v534_v31 = vpop.f32.mrb[1].mxu0  ;;  %v494_v32 = vadd.f32 %v493_v30, %v136_v26  ;;  %v495_v33 = vpop.f32.mrb[2].mxu1 }
 0x13e   :  { %v536_v34 = vpop.f32.mrb[2].mxu0  ;;  %v533_v35 = vadd.f32 %v532_v28, %v492_v29  ;;  %v496_v36 = vpop.f32.mrb[3].mxu1 }
 0x13f   :  { %v537_v37 = vpop.f32.mrb[3].mxu0  ;;  %v535_v38 = vadd.f32 %v534_v31, %v494_v32 }
 0x140   :  { %v671_v39 = vmul.f32 -1.442695, %v533_v35 }
 0x141   :  { %v672_v40 = vmul.f32 -1.442695, %v535_v38 }
 0x142   :  { %779 = vpow2.f32 %v671_v39 }
 0x143   :  { %781 = vpow2.f32 %v672_v40 }
 0x14c   :  { %v780_v41 = vpop.eup %779 }
 0x14d   :  { %v782_v42 = vpop.eup %781  ;;  %v545_v43 = vadd.f32 1.0, %v780_v41 }
 0x14e   :  { %v546_v44 = vadd.f32 1.0, %v782_v42 }
 0x14f   :  { %783 = vrcp.f32 %v545_v43 }
 0x150   :  { %785 = vrcp.f32 %v546_v44 }
 0x159   :  { %v784_v45 = vpop.eup %783 }
 0x15a   :  { %v786_v47 = vpop.eup %785  ;;  %551 = vst [vmem:[#allocation9] sm:$0xff] %v784_v45  ;;  %v555_v50 = vmul.f32 %v784_v45, %v955_v53  ;;  %v561_v51 = vmul.f32 %v784_v45, %v957_v54  ;;  %v567_v52 = vmul.f32 %v784_v45, %v967_v1  ;;  %v573_v55 = vmul.f32 %v784_v45, %v972_v11 }
 0x15b   :  { %552 = vst [vmem:[#allocation9 + $0x8] sm:$0xff] %v786_v47  ;;  %v556_v56 = vmul.f32 %v786_v47, %v945_v46  ;;  %v562_v58 = vmul.f32 %v786_v47, %v947_v48  ;;  %v568_v59 = vmul.f32 %v786_v47, %v949_v49  ;;  %v574_v60 = vmul.f32 %v786_v47, %v959_v57 }
 0x15c   :  { %557 = vst [vmem:[#allocation8] sm:$0xff] %v555_v50  ;;  %563 = vst [vmem:[#allocation8 + $0x10] sm:$0xff] %v561_v51 }
 0x15d   :  { %569 = vst [vmem:[#allocation8 + $0x20] sm:$0xff] %v567_v52  ;;  %575 = vst [vmem:[#allocation8 + $0x30] sm:$0xff] %v573_v55 }
 0x15e   :  { %842 = shalt.err (!%p839_p6)
}
 0x15f   :  { %s843_s21 = scalar_lea.hbm %s1030_s4, 256 }
 0x160   :  { %p844_p7 = scmp.ne.s32.totalorder %s1030_s4, %s843_s21  ;;  %p847_p8 = scmp.lt.u32.totalorder %s843_s21, %s1030_s4 }
 0x162   :  { %p849_p9 = pnand %p847_p8, %p844_p7 }
 0x164   :  { %852 = shalt.err (!%p849_p9)
}
 0x165   :  { %596 = dma.vmem_to_hbm [thread:$0]  %s980_s15, 256, %s1030_s4, [#allocation10]   ;;  %558 = vst [vmem:[#allocation8 + $0x8] sm:$0xff] %v556_v56  ;;  %564 = vst [vmem:[#allocation8 + $0x18] sm:$0xff] %v562_v58 }
 0x166   :  { %570 = vst [vmem:[#allocation8 + $0x28] sm:$0xff] %v568_v59  ;;  %576 = vst [vmem:[#allocation8 + $0x38] sm:$0xff] %v574_v60  ;;  %s853_s28 = scalar_lea.vmem %s990_s17, 1024  ;;  %p858_p11 = scmp.lt.s32.totalorder %s990_s17, %s990_s17 }
 0x167   :  { %p854_p10 = scmp.ne.s32.totalorder %s990_s17, %s853_s28  ;;  %p859_p12 = scmp.lt.s32.totalorder %s853_s28, %s853_s28 }
 0x169   :  { %p860_p13 = por %p859_p12, %p858_p11 }
 0x16b   :  { %p861_p0 = pnand %p860_p13, %p854_p10 }
 0x16d   :  { %864 = shalt.err (!%p861_p0)
}
 0x16e   :  { %s865_s5 = scalar_lea.hbm %s1029_s3, 1024 }
 0x16f   :  { %p866_p1 = scmp.ne.s32.totalorder %s1029_s3, %s865_s5  ;;  %p869_p2 = scmp.lt.u32.totalorder %s865_s5, %s1029_s3 }
 0x171   :  { %p871_p3 = pnand %p869_p2, %p866_p1 }
 0x173   :  { %874 = shalt.err (!%p871_p3)
}
 0x174   :  { %586 = dma.vmem_to_hbm [thread:$0]  %s990_s17, 1024, %s1029_s3, [#allocation5]  }
 0x175   :  { %879 = dma.done.wait [#allocation5], 1024  }
 0x176   :  { %880 = vsyncadd [#allocation5], 4294966272 }
 0x177   :  { %881 = dma.done.wait [#allocation10], 256  }
 0x178   :  { %882 = vsyncadd [#allocation10], 4294967040 }
 0x179   :  { %603 = vsyncpa [#allocation4], 1 }
 0x17a   :  { %604 = vsyncpa [#allocation7], 1 }
 0x17b   :  { %605 = vsyncpa [#allocation5], 1 }
 0x17c   :  { %606 = vsyncpa [#allocation10], 1 }

</bundles_post_ra>
